<compile_context>
chip_gen: v5e
topology: v5e:2x2
jax: 0.10.0
libtpu: 0.0.40
codegen_flags: <defaults>
</compile_context>

<pallas_src>
import jax
import jax.numpy as jnp
from jax import lax
from jax.experimental import pallas as pl
from jax.experimental.pallas import tpu as pltpu


def _pick_tb(rows: int, width: int, itemsize: int, block_rows) -> int:
    """Row-tile size: multiple of 8 (or the full row count)."""
    if block_rows is not None:
        tb = max(1, min(int(block_rows), rows))
        if tb < rows:
            tb = max(8, (tb // 8) * 8)
        return tb
    # ~2 MiB per input buffer per grid step; 2 inputs x 2 pipeline buffers = 8 MiB.
    target = (2 * 1024 * 1024) // (width * itemsize)
    target = max(8, (target // 8) * 8)
    return rows if rows <= target else target


def _make_kernel(*, tb, width, acc_rows, nblocks, valid_last, d, inv_n, lane_dense):
    ragged = valid_last != tb

    def accumulate(p_ref, t_ref, acc_ref, masked):
        diff = p_ref[...].astype(jnp.float32) - t_ref[...].astype(jnp.float32)
        sq = diff * diff
        if masked:
            # Static row mask for the ragged last tile (OOB block rows -> 0).
            row = lax.broadcasted_iota(jnp.int32, (tb, width), 0)
            sq = jnp.where(row < valid_last, sq, 0.0)
        if acc_rows == 8:
            part = sq.reshape(tb // 8, 8, width).sum(axis=0)  # pure VPU add tree
        else:
            part = sq.sum(axis=0, keepdims=True)
        acc_ref[...] += part

    def kernel(p_ref, t_ref, out_ref, acc_ref):
        j = pl.program_id(0)

        @pl.when(j == 0)
        def _init():
            acc_ref[...] = jnp.zeros_like(acc_ref)

        if ragged:
            @pl.when(j < nblocks - 1)
            def _full():
                accumulate(p_ref, t_ref, acc_ref, masked=False)

            @pl.when(j == nblocks - 1)
            def _tail():
                accumulate(p_ref, t_ref, acc_ref, masked=True)
        else:
            accumulate(p_ref, t_ref, acc_ref, masked=False)

        # Final epilogue: apply the per-column weight, reduce, and store ONCE.
        @pl.when(j == nblocks - 1)
        def _finalize():
            lane = lax.broadcasted_iota(jnp.int32, (1, width), 1)
            if lane_dense:
                # D divides 128 => D is a power of two; column index == lane & (D-1).
                mask = (lane & (d - 1)) < 3
            else:
                mask = lane < 3
            w = inv_n + 10.0 * mask.astype(jnp.float32)
            total = jnp.sum(acc_ref[...] * w)
            out_ref[...] = jnp.broadcast_to(total, out_ref.shape)

    return kernel


def custom_loss(preds: jax.Array, targets: jax.Array, *, block_rows=None) -> jax.Array:
    """Pallas TPU implementation of CustomLoss.forward (avg_penalty unused in forward)."""
    assert preds.shape == targets.shape
    assert preds.ndim == 2, "expected [batch, features] with features >= 3"
    B, D = preds.shape
    n_elems = B * D
    inv_n = 1.0 / float(n_elems)
    itemsize = jnp.dtype(preds.dtype).itemsize

    LANES = 128
    lane_dense = (D <= LANES) and (LANES % D == 0) and ((B * D) % LANES == 0)

    if lane_dense:
        rows, width = (B * D) // LANES, LANES
        p2 = preds.reshape(rows, LANES)   # contiguous reshape: no extra HBM pass
        t2 = targets.reshape(rows, LANES)
    else:
        # Fallback: keep [B, D] (last dim equals the full array dim).
        # TODO(synk): full-lane packing for D that doesn't divide 128 (periodic
        # per-position weight table) — current fallback is correct but lane-sparse.
        rows, width = B, D
        p2, t2 = preds, targets

    TB = _pick_tb(rows, width, itemsize, block_rows)
    nblocks = -(-rows // TB)
    valid_last = rows - (nblocks - 1) * TB
    acc_rows = 8 if TB % 8 == 0 else 1

    kernel = _make_kernel(tb=TB, width=width, acc_rows=acc_rows, nblocks=nblocks,
                          valid_last=valid_last, d=D, inv_n=inv_n,
                          lane_dense=lane_dense)

    out = pl.pallas_call(
        kernel,
        out_shape=jax.ShapeDtypeStruct((8, 128), jnp.float32),
        grid_spec=pltpu.PrefetchScalarGridSpec(
            num_scalar_prefetch=0,
            grid=(nblocks,),
            in_specs=[
                pl.BlockSpec((TB, width), lambda j: (j, 0)),
                pl.BlockSpec((TB, width), lambda j: (j, 0)),
            ],
            out_specs=pl.BlockSpec((8, 128), lambda j: (0, 0)),
            scratch_shapes=[pltpu.VMEM((acc_rows, width), jnp.float32)],
        ),
        compiler_params=pltpu.CompilerParams(
            dimension_semantics=("arbitrary",),
        ),
        cost_estimate=pl.CostEstimate(
            flops=3 * n_elems + 2 * width,
            transcendentals=0,
            bytes_accessed=2 * rows * width * itemsize + 8 * 128 * 4,
        ),
    )(p2, t2)

    return out[0, 0]


if __name__ == "__main__":
    def reference(p, t):
        return jnp.mean((p - t) ** 2) + 10.0 * jnp.sum((p[:, :3] - t[:, :3]) ** 2)

    key = jax.random.PRNGKey(0)
    k1, k2, k3, k4, k5, k6, k7, k8 = jax.random.split(key, 8)

    # 1) Small [B, D] regression-style input (lane-dense path, single block).
    p = jax.random.normal(k1, (8, 32), dtype=jnp.float32)
    t = jax.random.normal(k2, (8, 32), dtype=jnp.float32)
    got = jax.block_until_ready(custom_loss(p, t))
    want = reference(p, t)
    assert jnp.allclose(got, want, rtol=1e-5, atol=1e-5), (got, want)

    # 2) Multi-step grid: resident accumulator + once-only epilogue.
    p = jax.random.normal(k3, (2048, 32), dtype=jnp.float32)
    t = jax.random.normal(k4, (2048, 32), dtype=jnp.float32)
    got = jax.block_until_ready(custom_loss(p, t, block_rows=128))
    want = reference(p, t)
    assert jnp.allclose(got, want, rtol=1e-4, atol=1e-4), (got, want)

    # 3) Ragged last tile (rows not divisible by TB) handled by the in-kernel mask.
    p = jax.random.normal(k5, (1000, 32), dtype=jnp.float32)
    t = jax.random.normal(k6, (1000, 32), dtype=jnp.float32)
    got = jax.block_until_ready(custom_loss(p, t, block_rows=64))
    want = reference(p, t)
    assert jnp.allclose(got, want, rtol=1e-4, atol=1e-4), (got, want)

    # 4) Fallback layout (D does not divide 128).
    p = jax.random.normal(k7, (64, 48), dtype=jnp.float32)
    t = jax.random.normal(k8, (64, 48), dtype=jnp.float32)
    got = jax.block_until_ready(custom_loss(p, t))
    want = reference(p, t)
    assert jnp.allclose(got, want, rtol=1e-5, atol=1e-5), (got, want)

    print("KERNEL_OK")
</pallas_src>

<mosaic_0001>
module attributes {stable_mosaic.version = 11 : i64} {
  func.func @kernel(%arg0: i32, %arg1: memref<2x128xf32, #tpu.memory_space<vmem>>, %arg2: memref<2x128xf32, #tpu.memory_space<vmem>>, %arg3: memref<8x128xf32, #tpu.memory_space<vmem>>, %arg4: memref<1x128xf32, #tpu.memory_space<vmem>>) attributes {dimension_semantics = [#tpu.dimension_semantics<arbitrary>], iteration_bounds = array<i64: 1>, scalar_prefetch = 0 : i64, scratch_operands = 1 : i64, tpu.core_type = #tpu.core_type<tc>, window_params = [{transform_indices = @transform_0, window_bounds = array<i64: 2, 128>}, {transform_indices = @transform_1, window_bounds = array<i64: 2, 128>}, {pipeline_mode = #tpu.pipeline_mode<synchronous>, transform_indices = @transform_2, window_bounds = array<i64: 8, 128>}]} {
    %c0_i32 = arith.constant 0 : i32
    %0 = arith.cmpi eq, %arg0, %c0_i32 : i32
    %1 = arith.extui %0 : i1 to i32
    %c0_i32_0 = arith.constant 0 : i32
    %2 = arith.cmpi ne, %1, %c0_i32_0 : i32
    scf.if %2 {
      %cst_10 = arith.constant 0.000000e+00 : f32
      %15 = vector.broadcast %cst_10 : f32 to vector<1x128xf32>
      %c0_11 = arith.constant 0 : index
      %c0_12 = arith.constant 0 : index
      %16 = vector.load %arg4[%c0_11, %c0_12] : memref<1x128xf32, #tpu.memory_space<vmem>>, vector<1x128xf32>
      tpu.vector_store %arg4[%c0_11, %c0_12], %15 {strides = array<i32>} : memref<1x128xf32, #tpu.memory_space<vmem>>, vector<1x128xf32>,
    } else {
    }
    %c0 = arith.constant 0 : index
    %c0_1 = arith.constant 0 : index
    %3 = vector.load %arg1[%c0, %c0_1] : memref<2x128xf32, #tpu.memory_space<vmem>>, vector<2x128xf32>
    %c0_2 = arith.constant 0 : index
    %c0_3 = arith.constant 0 : index
    %4 = vector.load %arg2[%c0_2, %c0_3] : memref<2x128xf32, #tpu.memory_space<vmem>>, vector<2x128xf32>
    %5 = arith.subf %3, %4 : vector<2x128xf32>
    %6 = arith.mulf %5, %5 : vector<2x128xf32>
    %cst = arith.constant dense<0.000000e+00> : vector<128xf32>
    %7 = vector.multi_reduction <add>, %6, %cst [0] : vector<2x128xf32> to vector<128xf32>
    %8 = vector.shape_cast %7 : vector<128xf32> to vector<1x128xf32>
    %c0_4 = arith.constant 0 : index
    %c0_5 = arith.constant 0 : index
    %9 = vector.load %arg4[%c0_4, %c0_5] : memref<1x128xf32, #tpu.memory_space<vmem>>, vector<1x128xf32>
    %10 = arith.addf %9, %8 : vector<1x128xf32>
    %c0_6 = arith.constant 0 : index
    %c0_7 = arith.constant 0 : index
    %11 = vector.load %arg4[%c0_6, %c0_7] : memref<1x128xf32, #tpu.memory_space<vmem>>, vector<1x128xf32>
    tpu.vector_store %arg4[%c0_6, %c0_7], %10 {strides = array<i32>} : memref<1x128xf32, #tpu.memory_space<vmem>>, vector<1x128xf32>,
    %c0_i32_8 = arith.constant 0 : i32
    %12 = arith.cmpi eq, %arg0, %c0_i32_8 : i32
    %13 = arith.extui %12 : i1 to i32
    %c0_i32_9 = arith.constant 0 : i32
    %14 = arith.cmpi ne, %13, %c0_i32_9 : i32
    scf.if %14 {
      %15 = tpu.iota {dimensions = array<i32: 1>} : vector<1x128xi32>
      %c31_i32 = arith.constant 31 : i32
      %16 = vector.broadcast %c31_i32 : i32 to vector<1x128xi32>
      %17 = arith.andi %15, %16 : vector<1x128xi32>
      %c3_i32 = arith.constant 3 : i32
      %18 = vector.broadcast %c3_i32 : i32 to vector<1x128xi32>
      %19 = arith.cmpi slt, %17, %18 : vector<1x128xi32>
      %20 = arith.extui %19 : vector<1x128xi1> to vector<1x128xi32>
      %21 = arith.sitofp %20 : vector<1x128xi32> to vector<1x128xf32>
      %cst_10 = arith.constant 1.000000e+01 : f32
      %22 = vector.broadcast %cst_10 : f32 to vector<1x128xf32>
      %23 = arith.mulf %22, %21 : vector<1x128xf32>
      %cst_11 = arith.constant 3.906250e-03 : f32
      %24 = vector.broadcast %cst_11 : f32 to vector<1x128xf32>
      %25 = arith.addf %24, %23 : vector<1x128xf32>
      %c0_12 = arith.constant 0 : index
      %c0_13 = arith.constant 0 : index
      %26 = vector.load %arg4[%c0_12, %c0_13] : memref<1x128xf32, #tpu.memory_space<vmem>>, vector<1x128xf32>
      %27 = arith.mulf %26, %25 : vector<1x128xf32>
      %28 = vector.shape_cast %27 : vector<1x128xf32> to vector<1x1x128xf32>
      %cst_14 = arith.constant dense<0.000000e+00> : vector<1xf32>
      %29 = vector.multi_reduction <add>, %28, %cst_14 [1, 2] : vector<1x1x128xf32> to vector<1xf32>
      %30 = vector.shape_cast %29 : vector<1xf32> to vector<1x1x1xf32>
      %31 = vector.extract %30[0, 0, 0] : f32 from vector<1x1x1xf32>
      %32 = vector.broadcast %31 : f32 to vector<8x128xf32>
      %c0_15 = arith.constant 0 : index
      %c0_16 = arith.constant 0 : index
      %33 = vector.load %arg3[%c0_15, %c0_16] : memref<8x128xf32, #tpu.memory_space<vmem>>, vector<8x128xf32>
      tpu.vector_store %arg3[%c0_15, %c0_16], %32 {strides = array<i32>} : memref<8x128xf32, #tpu.memory_space<vmem>>, vector<8x128xf32>,
    } else {
    }
    return
  }
  func.func @transform_0(%arg0: i32) -> (i32, i32) {
    %c0_i32 = arith.constant 0 : i32
    %c0_i32_0 = arith.constant 0 : i32
    return %arg0, %c0_i32 : i32, i32
  }
  func.func @transform_1(%arg0: i32) -> (i32, i32) {
    %c0_i32 = arith.constant 0 : i32
    %c0_i32_0 = arith.constant 0 : i32
    return %arg0, %c0_i32 : i32, i32
  }
  func.func @transform_2(%arg0: i32) -> (i32, i32) {
    %c0_i32 = arith.constant 0 : i32
    %c0_i32_0 = arith.constant 0 : i32
    %c0_i32_1 = arith.constant 0 : i32
    return %c0_i32, %c0_i32_0 : i32, i32
  }
}

</mosaic_0001>

<bundles_post_ra>
// kernel: tpu_custom_call.1
= control target key start
LH: loop header
LB: loop body
LE: loop exit
PB: predicated region body
PF: predicated region fallthrough
CT: control target
= control target key end

     0   :  { %7 = vsyncpa [#allocation4], 0  ;;  %s217_s0 = inlined_call_operand.hbm [shape: f32[2,128], index: 0, kind: input, shape index: {}]   ;;  %s218_s1 = inlined_call_operand.hbm [shape: f32[2,128], index: 1, kind: input, shape index: {}]   ;;  %s219_s2 = inlined_call_operand.hbm [shape: f32[8,128], index: 2, kind: output, shape index: {}]  }
   0x1   :  { %8 = vsyncpa [#allocation7], 0 }
   0x2   :  { %9 = vsyncpa [#allocation5], 0  ;;  %s15_s11 = sshll.u32 %s217_s0, 4  ;;  %s189_s12 = smov [#allocation3]   ;;  %s16_s11 = int_to_ptr.hbm [resolvable:$true] %s15_s11 }
   0x3   :  { %s17_s13 = sshll.u32 %s189_s12, 4  ;;  %s26_s16 = sshll.u32 %s218_s1, 4  ;;  %s18_s13 = int_to_ptr.vmem [resolvable:$true] %s17_s13  ;;  %s27_s16 = int_to_ptr.hbm [resolvable:$true] %s26_s16 }
   0x4   :  { %20 = dma.hbm_to_vmem [thread:$0]  %s16_s11, 32, %s18_s13, [#allocation4]  }
   0x5   :  { %s190_s17 = smov [#allocation6]  }
   0x6   :  { %s28_s18 = sshll.u32 %s190_s17, 4  ;;  %s29_s18 = int_to_ptr.vmem [resolvable:$true] %s28_s18 }
   0x7   :  { %31 = dma.hbm_to_vmem [thread:$0]  %s27_s16, 32, %s29_s18, [#allocation7]  }
   0x8   :  { %183 = dma.done.wait [#allocation4], 32  }
   0x9   :  { %184 = vsyncadd [#allocation4], 4294967264 }
   0xa   :  { %185 = dma.done.wait [#allocation7], 32  }
   0xb   :  { %186 = vsyncadd [#allocation7], 4294967264  ;;  %v191_v0 = vmov 0.0   ;;  %v45_v1 = vld [vmem:[#allocation3] sm:$0x3]  ;;  %vm49_vm0 = vcmask 1041408   ;;  %v63_v4 = vlaneseq }
   0xc   :  { %44 = vst [vmem:[#allocation2] sm:$0x1] %v191_v0  ;;  %v46_v2 = vld [vmem:[#allocation6] sm:$0x3]  ;;  %vm73_vm2 = vcmask 1040384   ;;  %s192_s0 = smov [#allocation8]  }
   0xd   :  { %v47_v3 = vsub.f32 %v45_v1, %v46_v2  ;;  %v64_v8 = vand.u32 127, %v63_v4  ;;  %s91_s1 = sshll.u32 %s192_s0, 4  ;;  %s93_s21 = sshll.u32 %s219_s2, 4  ;;  %s92_s1 = int_to_ptr.vmem [resolvable:$true] %s91_s1  ;;  %s94_s21 = int_to_ptr.hbm [resolvable:$true] %s93_s21 }
   0xf   :  { %v48_v5 = vmul.f32 %v47_v3, %v47_v3  ;;  %v65_v11 = vand.u32 31, %v64_v8 }
  0x11   :  { %v50_v6 = vsel %vm49_vm0, %v48_v5, 0.0  ;;  %vm66_vm1 = vcmp.lt.s32.totalorder %v65_v11, 3 }
  0x12   :  { %v51_v7 = vrot.slane %v50_v6, 4  ;;  %v104_v16 = vsel %vm66_vm1, 1.0, %v191_v0 }
  0x13   :  { %v57_v14 = vld [vmem:[#allocation2] sm:$0x1]  ;;  %v69_v18 = vmul.f32 10.0, %v104_v16 }
  0x14   :  { %v52_v9 = vadd.f32 %v51_v7, %v50_v6 }
  0x15   :  { %v70_v19 = vadd.f32 0.00390625, %v69_v18 }
  0x16   :  { %v53_v10 = vrot.slane %v52_v9, 2 }
  0x18   :  { %v54_v12 = vadd.f32 %v53_v10, %v52_v9 }
  0x1a   :  { %v55_v13 = vrot.slane %v54_v12, 1 }
  0x1c   :  { %v56_v15 = vadd.f32 %v55_v13, %v54_v12 }
  0x1e   :  { %v58_v17 = vadd.f32 %v57_v14, %v56_v15 }
  0x20   :  { %59 = vst [vmem:[#allocation2] sm:$0x1] %v58_v17 }
  0x27   :  { %v71_v20 = vld [vmem:[#allocation2] sm:$0x1] }
  0x28   :  { %v72_v21 = vmul.f32 %v71_v20, %v70_v19 }
  0x2a   :  { %v74_v22 = vsel %vm73_vm2, %v72_v21, 0.0 }
  0x2b   :  { %75 = vadd.xlane.f32.xlu0 %v74_v22 }
  0x9e   :  { %v76_v23 = vpop.xlane.xlu0 %75 }
  0x9f   :  { %v77_v24 = vrot.slane %v76_v23, 4 }
  0xa1   :  { %v78_v25 = vadd.f32 %v77_v24, %v76_v23 }
  0xa3   :  { %v79_v26 = vrot.slane %v78_v25, 2 }
  0xa5   :  { %v80_v27 = vadd.f32 %v79_v26, %v78_v25 }
  0xa7   :  { %v81_v28 = vrot.slane %v80_v27, 1 }
  0xa9   :  { %v82_v29 = vadd.f32 %v81_v28, %v80_v27 }
  0xab   :  { %105 = vpush %v82_v29 }
  0xdc   :  { %s106_s22 = spop %105 }
  0xdd   :  { %v84_v30 = vstv %s106_s22 }
  0xde   :  { %85 = vst [vmem:[#allocation8] sm:$0xff] %v84_v30 }
  0xdf   :  { %96 = dma.vmem_to_hbm [thread:$0]  %s92_s1, 128, %s94_s21, [#allocation5]  }
  0xe0   :  { %187 = dma.done.wait [#allocation5], 128  }
  0xe1   :  { %188 = vsyncadd [#allocation5], 4294967168 }
  0xe2   :  { %101 = vsyncpa [#allocation4], 1 }
  0xe3   :  { %102 = vsyncpa [#allocation7], 1 }
  0xe4   :  { %103 = vsyncpa [#allocation5], 1 }

</bundles_post_ra>
